<compile_context>
chip_gen: v7x
topology: tpu7x:2x2x1
jax: 0.10.0
libtpu: 0.0.40
codegen_flags: <defaults>
</compile_context>

<pallas_src>
import functools

import jax
import jax.numpy as jnp
from jax import lax
from jax.experimental import pallas as pl
from jax.experimental.pallas import tpu as pltpu

KSIZE = 7
PAD = 3
EPS_LN = 1e-6
EPS_GRN = 1e-6
INV_SQRT2 = 0.7071067811865476


# ---------------------------------------------------------------------------
# Spec module: LayerNorm (channels_last / channels_first) as standalone kernels
# ---------------------------------------------------------------------------
def _ln_channels_last_kernel(x_ref, wb_ref, o_ref, *, eps):
    # x_ref: (tm, C) rows = tokens, lanes = features; wb_ref: (2, C) = [weight; bias]
    x = x_ref[...]
    u = jnp.mean(x, axis=-1, keepdims=True)
    d = x - u
    var = jnp.mean(d * d, axis=-1, keepdims=True)
    o_ref[...] = d * lax.rsqrt(var + eps) * wb_ref[0:1, :] + wb_ref[1:2, :]


def layer_norm_channels_last(x, weight, bias, eps=1e-6):
    """F.layer_norm over the trailing feature dim (spec: data_format='channels_last')."""
    shp = x.shape
    C = shp[-1]
    xf = x.reshape(-1, C)
    N = xf.shape[0]
    tm = 128 if N % 128 == 0 else N            # token tile (full block if N is odd/small)
    wb = jnp.stack([weight, bias], axis=0)     # (2, C): one DMA for both vectors
    out = pl.pallas_call(
        functools.partial(_ln_channels_last_kernel, eps=eps),
        out_shape=jax.ShapeDtypeStruct((N, C), x.dtype),
        grid_spec=pltpu.PrefetchScalarGridSpec(
            num_scalar_prefetch=0,
            grid=(N // tm,),
            in_specs=[pl.BlockSpec((tm, C), lambda i: (i, 0)),
                      pl.BlockSpec((2, C), lambda i: (0, 0))],
            out_specs=pl.BlockSpec((tm, C), lambda i: (i, 0))),
        compiler_params=pltpu.CompilerParams(dimension_semantics=("parallel",)),
    )(xf, wb)
    return out.reshape(shp)


def _ln_channels_first_kernel(x_ref, wb_ref, o_ref, *, eps):
    # x_ref: (C, H*W), channels on the sublane axis; wb_ref: (C, 2) = [weight, bias]
    x = x_ref[...]
    u = jnp.mean(x, axis=0, keepdims=True)
    d = x - u
    var = jnp.mean(d * d, axis=0, keepdims=True)
    o_ref[...] = d * lax.rsqrt(var + eps) * wb_ref[:, 0:1] + wb_ref[:, 1:2]


def layer_norm_channels_first(x_nchw, weight, bias, eps=1e-6):
    """Channels-first LayerNorm: normalize over C of an NCHW tensor (spec branch 2)."""
    B, C, H, W = x_nchw.shape
    HW = H * W
    wb = jnp.stack([weight, bias], axis=-1)    # (C, 2)
    out = pl.pallas_call(
        functools.partial(_ln_channels_first_kernel, eps=eps),
        out_shape=jax.ShapeDtypeStruct((B, C, HW), x_nchw.dtype),
        grid_spec=pltpu.PrefetchScalarGridSpec(
            num_scalar_prefetch=0,
            grid=(B,),
            in_specs=[pl.BlockSpec((None, C, HW), lambda b: (b, 0, 0)),
                      pl.BlockSpec((C, 2), lambda b: (0, 0))],
            out_specs=pl.BlockSpec((None, C, HW), lambda b: (b, 0, 0))),
        compiler_params=pltpu.CompilerParams(dimension_semantics=("parallel",)),
    )(x_nchw.reshape(B, C, HW), wb)
    return out.reshape(B, C, H, W)


def layer_norm_channels_last_ref(x, weight, bias, eps=1e-6):
    u = jnp.mean(x, -1, keepdims=True)
    s = jnp.mean((x - u) ** 2, -1, keepdims=True)
    return (x - u) / jnp.sqrt(s + eps) * weight + bias


def layer_norm_channels_first_ref(x, weight, bias, eps=1e-6):
    u = jnp.mean(x, 1, keepdims=True)
    s = jnp.mean((x - u) ** 2, 1, keepdims=True)
    return ((x - u) / jnp.sqrt(s + eps) * weight[None, :, None, None]
            + bias[None, :, None, None])


# ---------------------------------------------------------------------------
# Fused ConvNeXtV2 block (dwconv7x7 -> LayerNorm -> pwconv1 -> GELU -> GRN ->
# pwconv2 -> residual), one Pallas kernel, one batch element per grid step.
# ---------------------------------------------------------------------------
def _convnextv2_kernel(x_ref, wdw_ref, w1_ref, w2_ref, smalls_ref, bigs_ref,
                       out_ref, xpad_s, dw_s, cmp_s, *, H, W):
    # x_ref:      (C, H*W)   f32   channels-first-flat, lane-dense spatial
    # wdw_ref:    (C, 49)    f32   depthwise taps, tap index = kh*7 + kw
    # w1_ref:     (4C, C)    bf16  pwconv1 weight with LN weight pre-folded
    # w2_ref:     (C, 4C)    bf16  pwconv2 weight
    # smalls_ref: (C, 2)     f32   cols = [dw bias, pw2 bias]
    # bigs_ref:   (4C, 3)    f32   cols = [pw1 bias (LN bias folded), GRN gamma, GRN beta]
    # out_ref:    (C, H*W)   f32
    # xpad_s:     (C, Hp*Wp + KSIZE-1) f32  zero-padded input scratch (+ tap-overrun tail)
    # dw_s:       (C, H*Wp)  f32   dwconv output, padded width
    # cmp_s:      (C, H*W)   f32   compacted dwconv output
    C = x_ref.shape[0]
    Wp = W + 2 * PAD
    HWp = H * Wp
    SCR = xpad_s.shape[1]

    # ---- build the zero-padded input in VMEM: halo-only zeroing ----
    xpad_s[:, 0:PAD * Wp + PAD] = jnp.zeros((C, PAD * Wp + PAD), jnp.float32)
    zgap = jnp.zeros((C, 2 * PAD), jnp.float32)
    for h in range(H - 1):                     # right pad of row h + left pad of row h+1
        g = (PAD + h) * Wp + PAD + W
        xpad_s[:, g:g + 2 * PAD] = zgap
    last = (PAD + H - 1) * Wp + PAD + W        # right pad of last row + bottom halo + tail
    xpad_s[:, last:SCR] = jnp.zeros((C, SCR - last), jnp.float32)
    for h in range(H):                         # interior rows
        dst = (PAD + h) * Wp + PAD
        xpad_s[:, dst:dst + W] = x_ref[:, h * W:(h + 1) * W]

    # ---- depthwise 7x7 conv: 49 lane-offset tap loads, full-vreg multiply-adds ----
    # TODO(synk): per-kh tap reuse / pltpu.roll-based kw shifts (XLU slot) would cut the
    #             unaligned load count 7x; kept as plain ref loads for lowering robustness.
    acc = jnp.zeros((C, HWp), jnp.float32)
    for kh in range(KSIZE):
        for kw in range(KSIZE):
            t = kh * KSIZE + kw
            off = kh * Wp + kw
            acc = acc + xpad_s[:, off:off + HWp] * wdw_ref[:, t:t + 1]
    dw_s[...] = acc + smalls_ref[:, 0:1]                           # + dw bias

    # ---- compact to the un-padded (C, H*W) layout: drop the W-padding junk columns ----
    for h in range(H):
        cmp_s[:, h * W:(h + 1) * W] = dw_s[:, h * Wp:h * Wp + W]
    y = cmp_s[...]                                                  # (C, HW) lane-dense

    # ---- LayerNorm over channels, two-pass stats, eps=1e-6 (affine folded into w1/b1) ----
    u = jnp.mean(y, axis=0, keepdims=True)
    d = y - u
    var = jnp.mean(d * d, axis=0, keepdims=True)
    yn = d * lax.rsqrt(var + EPS_LN)

    # ---- pwconv1 (dim -> 4*dim) on the MXU: bf16 operands, f32 accumulation ----
    h1 = jnp.dot(w1_ref[...], yn.astype(jnp.bfloat16),
                 preferred_element_type=jnp.float32)                # (4C, HW)
    h1 = h1 + bigs_ref[:, 0:1]

    # ---- GELU (tanh approximation; tanh runs on the EUP slot) ----
    c0 = 0.7978845608028654  # sqrt(2/pi)
    h1 = 0.5 * h1 * (1.0 + jnp.tanh(c0 * (h1 + 0.044715 * (h1 * h1 * h1))))

    # ---- GRN: global response norm over the spatial (lane) axis ----
    gx = jnp.sqrt(jnp.sum(h1 * h1, axis=1, keepdims=True))          # (4C, 1)
    nx = gx / (jnp.mean(gx, axis=0, keepdims=True) + EPS_GRN)       # (4C, 1)
    h1 = bigs_ref[:, 1:2] * (h1 * nx) + bigs_ref[:, 2:3] + h1

    # ---- pwconv2 (4*dim -> dim) + bias + residual, single lane-dense full-tile store ----
    o = jnp.dot(w2_ref[...], h1.astype(jnp.bfloat16),
                preferred_element_type=jnp.float32)                 # (C, HW)
    out_ref[...] = o + smalls_ref[:, 1:2] + x_ref[...]


def convnextv2_block(x_nchw, params):
    """x_nchw: (B, C, H, W) float32.  Returns (B, C, H, W) float32."""
    B, C, H, W = x_nchw.shape
    hid = 4 * C
    Hp, Wp = H + 2 * PAD, W + 2 * PAD
    HW = H * W
    scr = Hp * Wp + (KSIZE - 1)

    # Activation: NCHW -> (B, C, H*W) is a free contiguous reshape (no transpose).
    x_cf = x_nchw.reshape(B, C, HW)

    # Parameter repack (once per call, under jit).  LN affine folded into pwconv1 (f32,
    # before the bf16 cast): w1' = w1 * lnw, b1' = b1 + w1 @ lnb.
    w1_f = params["w1"] * params["lnw"][None, :]
    b1_f = params["b1"] + params["w1"] @ params["lnb"]
    w1_bf = w1_f.astype(jnp.bfloat16)                                       # (hid, C)
    w2_bf = params["w2"].astype(jnp.bfloat16)                               # (C, hid)
    wdw_cf = params["wdw"].reshape(KSIZE * KSIZE, C).T                      # (C, 49)
    smalls = jnp.stack([params["bdw"], params["b2"]], axis=-1)              # (C, 2)
    bigs = jnp.stack([b1_f, params["gamma"], params["beta"]], axis=-1)      # (hid, 3)

    const = lambda b: (0, 0)  # grid-invariant weight/bias blocks

    out_cf = pl.pallas_call(
        functools.partial(_convnextv2_kernel, H=H, W=W),
        out_shape=jax.ShapeDtypeStruct((B, C, HW), jnp.float32),
        grid_spec=pltpu.PrefetchScalarGridSpec(
            num_scalar_prefetch=0,
            grid=(B,),   # one batch element per step; keep B even for the 2 v7x cores
            in_specs=[
                pl.BlockSpec((None, C, HW), lambda b: (b, 0, 0)),   # activation
                pl.BlockSpec((C, KSIZE * KSIZE), const),            # dw taps
                pl.BlockSpec((hid, C), const),                      # pwconv1 W (bf16)
                pl.BlockSpec((C, hid), const),                      # pwconv2 W (bf16)
                pl.BlockSpec((C, 2), const),                        # packed C-sized vectors
                pl.BlockSpec((hid, 3), const),                      # packed 4C-sized vectors
            ],
            out_specs=pl.BlockSpec((None, C, HW), lambda b: (b, 0, 0)),
            scratch_shapes=[
                pltpu.VMEM((C, scr), jnp.float32),       # padded input (+ tap tail)
                pltpu.VMEM((C, H * Wp), jnp.float32),    # dwconv output, padded width
                pltpu.VMEM((C, HW), jnp.float32),        # compacted dwconv output
            ]),
        compiler_params=pltpu.CompilerParams(
            dimension_semantics=("parallel",),
            vmem_limit_bytes=32 * 1024 * 1024),
    )(x_cf, wdw_cf, w1_bf, w2_bf, smalls, bigs)

    return out_cf.reshape(B, C, H, W)


def convnextv2_block_ref(x_nchw, params):
    """Pure-JAX f32 reference (module semantics: exact-erf GELU, no folding)."""
    B, C, H, W = x_nchw.shape
    x = jnp.transpose(x_nchw, (0, 2, 3, 1))                       # NHWC
    xpad = jnp.pad(x, ((0, 0), (PAD, PAD), (PAD, PAD), (0, 0)))
    acc = jnp.zeros_like(x)
    for kh in range(KSIZE):
        for kw in range(KSIZE):
            acc = acc + xpad[:, kh:kh + H, kw:kw + W, :] * params["wdw"][kh, kw, :]
    y = acc + params["bdw"]
    u = jnp.mean(y, -1, keepdims=True)
    s = jnp.mean((y - u) ** 2, -1, keepdims=True)
    yn = (y - u) * lax.rsqrt(s + EPS_LN) * params["lnw"] + params["lnb"]
    h = jnp.einsum("bhwc,dc->bhwd", yn, params["w1"]) + params["b1"]
    h = 0.5 * h * (1.0 + lax.erf(h * INV_SQRT2))
    gx = jnp.sqrt(jnp.sum(h * h, axis=(1, 2), keepdims=True))
    nx = gx / (jnp.mean(gx, -1, keepdims=True) + EPS_GRN)
    h = params["gamma"] * (h * nx) + params["beta"] + h
    o = jnp.einsum("bhwd,cd->bhwc", h, params["w2"]) + params["b2"] + x
    return jnp.transpose(o, (0, 3, 1, 2))


def make_params(key, dim):
    hid = 4 * dim
    ks = jax.random.split(key, 10)
    n = lambda k, s, sc=0.1: sc * jax.random.normal(k, s, jnp.float32)
    return dict(
        wdw=n(ks[0], (KSIZE, KSIZE, dim)),   # depthwise 7x7 taps, (kh, kw, c)
        bdw=n(ks[1], (dim,)),
        lnw=1.0 + n(ks[2], (dim,)),          # LayerNorm weight (ones + jitter)
        lnb=n(ks[3], (dim,)),
        w1=n(ks[4], (hid, dim)),             # nn.Linear(dim, 4*dim).weight  (out, in)
        b1=n(ks[5], (hid,)),
        gamma=n(ks[6], (hid,)),              # GRN gamma / beta
        beta=n(ks[7], (hid,)),
        w2=n(ks[8], (dim, hid)),             # nn.Linear(4*dim, dim).weight  (out, in)
        b2=n(ks[9], (dim,)),
    )


if __name__ == "__main__":
    B, dim, H, W = 2, 32, 16, 16
    key = jax.random.PRNGKey(0)
    k_lnw, k_lnb, k_xcl, k_xcf, kp, kx = jax.random.split(key, 6)

    # --- spec module: LayerNorm, both data formats ---
    w_ln = 1.0 + 0.1 * jax.random.normal(k_lnw, (dim,), jnp.float32)
    b_ln = 0.1 * jax.random.normal(k_lnb, (dim,), jnp.float32)

    x_cl = jax.random.normal(k_xcl, (B, H, W, dim), jnp.float32)
    out_cl = jax.block_until_ready(jax.jit(layer_norm_channels_last)(x_cl, w_ln, b_ln))
    ref_cl = layer_norm_channels_last_ref(x_cl, w_ln, b_ln)
    d_cl = float(jnp.max(jnp.abs(out_cl - ref_cl)))
    assert jnp.allclose(out_cl, ref_cl, atol=1e-4, rtol=1e-4), d_cl

    x_cf = jax.random.normal(k_xcf, (B, dim, H, W), jnp.float32)
    out_cf = jax.block_until_ready(jax.jit(layer_norm_channels_first)(x_cf, w_ln, b_ln))
    ref_cf = layer_norm_channels_first_ref(x_cf, w_ln, b_ln)
    d_cf = float(jnp.max(jnp.abs(out_cf - ref_cf)))
    assert jnp.allclose(out_cf, ref_cf, atol=1e-4, rtol=1e-4), d_cf

    # --- fused ConvNeXtV2 block around the channels_last LayerNorm ---
    params = make_params(kp, dim)
    xb = jax.random.normal(kx, (B, dim, H, W), jnp.float32)
    out_b = jax.block_until_ready(jax.jit(convnextv2_block)(xb, params))
    ref_b = convnextv2_block_ref(xb, params)
    assert out_b.shape == (B, dim, H, W)
    d_b = float(jnp.max(jnp.abs(out_b - ref_b)))
    # bf16 MXU operands + tanh-approx GELU vs f32/erf reference -> ~1e-3 typical error.
    assert jnp.allclose(out_b, ref_b, atol=1e-2, rtol=1e-2), d_b

    print("KERNEL_OK")
</pallas_src>

<mosaic_0001>
module attributes {stable_mosaic.version = 11 : i64} {
  func.func @_ln_channels_last_kernel(%arg0: i32, %arg1: memref<128x32xf32, #tpu.memory_space<vmem>>, %arg2: memref<2x32xf32, #tpu.memory_space<vmem>>, %arg3: memref<128x32xf32, #tpu.memory_space<vmem>>) attributes {dimension_semantics = [#tpu.dimension_semantics<parallel>], iteration_bounds = array<i64: 4>, scalar_prefetch = 0 : i64, scratch_operands = 0 : i64, tpu.core_type = #tpu.core_type<tc>, window_params = [{transform_indices = @transform_0, window_bounds = array<i64: 128, 32>}, {pipeline_mode = #tpu.pipeline_mode<synchronous>, transform_indices = @transform_1, window_bounds = array<i64: 2, 32>}, {transform_indices = @transform_2, window_bounds = array<i64: 128, 32>}]} {
    %c0 = arith.constant 0 : index
    %c0_0 = arith.constant 0 : index
    %0 = vector.load %arg1[%c0, %c0_0] : memref<128x32xf32, #tpu.memory_space<vmem>>, vector<128x32xf32>
    %cst = arith.constant dense<0.000000e+00> : vector<128xf32>
    %1 = vector.multi_reduction <add>, %0, %cst [1] : vector<128x32xf32> to vector<128xf32>
    %2 = vector.shape_cast %1 : vector<128xf32> to vector<128x1xf32>
    %cst_1 = arith.constant 3.200000e+01 : f32
    %3 = vector.broadcast %cst_1 : f32 to vector<128x1xf32>
    %4 = arith.divf %2, %3 : vector<128x1xf32>
    %5 = vector.broadcast %4 : vector<128x1xf32> to vector<128x32xf32>
    %6 = arith.subf %0, %5 : vector<128x32xf32>
    %7 = arith.mulf %6, %6 : vector<128x32xf32>
    %cst_2 = arith.constant dense<0.000000e+00> : vector<128xf32>
    %8 = vector.multi_reduction <add>, %7, %cst_2 [1] : vector<128x32xf32> to vector<128xf32>
    %9 = vector.shape_cast %8 : vector<128xf32> to vector<128x1xf32>
    %cst_3 = arith.constant 3.200000e+01 : f32
    %10 = vector.broadcast %cst_3 : f32 to vector<128x1xf32>
    %11 = arith.divf %9, %10 : vector<128x1xf32>
    %cst_4 = arith.constant 9.99999997E-7 : f32
    %12 = vector.broadcast %cst_4 : f32 to vector<128x1xf32>
    %13 = arith.addf %11, %12 : vector<128x1xf32>
    %14 = math.rsqrt %13 : vector<128x1xf32>
    %15 = vector.broadcast %14 : vector<128x1xf32> to vector<128x32xf32>
    %16 = arith.mulf %6, %15 : vector<128x32xf32>
    %c0_5 = arith.constant 0 : index
    %c0_6 = arith.constant 0 : index
    %17 = vector.load %arg2[%c0_5, %c0_6] : memref<2x32xf32, #tpu.memory_space<vmem>>, vector<1x32xf32>
    %18 = vector.broadcast %17 : vector<1x32xf32> to vector<128x32xf32>
    %19 = arith.mulf %16, %18 : vector<128x32xf32>
    %c1 = arith.constant 1 : index
    %c0_7 = arith.constant 0 : index
    %20 = vector.load %arg2[%c1, %c0_7] : memref<2x32xf32, #tpu.memory_space<vmem>>, vector<1x32xf32>
    %21 = vector.broadcast %20 : vector<1x32xf32> to vector<128x32xf32>
    %22 = arith.addf %19, %21 : vector<128x32xf32>
    %c0_8 = arith.constant 0 : index
    %c0_9 = arith.constant 0 : index
    %23 = vector.load %arg3[%c0_8, %c0_9] : memref<128x32xf32, #tpu.memory_space<vmem>>, vector<128x32xf32>
    tpu.vector_store %arg3[%c0_8, %c0_9], %22 {strides = array<i32>} : memref<128x32xf32, #tpu.memory_space<vmem>>, vector<128x32xf32>,
    return
  }
  func.func @transform_0(%arg0: i32) -> (i32, i32) {
    %c0_i32 = arith.constant 0 : i32
    %c0_i32_0 = arith.constant 0 : i32
    return %arg0, %c0_i32 : i32, i32
  }
  func.func @transform_1(%arg0: i32) -> (i32, i32) {
    %c0_i32 = arith.constant 0 : i32
    %c0_i32_0 = arith.constant 0 : i32
    %c0_i32_1 = arith.constant 0 : i32
    return %c0_i32, %c0_i32_0 : i32, i32
  }
  func.func @transform_2(%arg0: i32) -> (i32, i32) {
    %c0_i32 = arith.constant 0 : i32
    %c0_i32_0 = arith.constant 0 : i32
    return %arg0, %c0_i32 : i32, i32
  }
}

</mosaic_0001>

<bundles_post_ra>
// kernel: layer_norm_channels_last.1
= control target key start
LH: loop header
LB: loop body
LE: loop exit
PB: predicated region body
PF: predicated region fallthrough
CT: control target
= control target key end

     0   :  { %7 = vsyncpa [#allocation3], 0  ;;  %s1165_s0 = inlined_call_operand.hbm [shape: f32[512,32], index: 0, kind: input, shape index: {}]   ;;  %s1166_s1 = inlined_call_operand.vmem [shape: f32[2,32], index: 1, kind: input, shape index: {}]   ;;  %s1167_s2 = inlined_call_operand.hbm [shape: f32[512,32], index: 2, kind: output, shape index: {}]  }
   0x1   :  { %9 = vsyncpa [#allocation3 + $0x1], 0 }
   0x2   :  { %10 = vsyncpa [#allocation4], 0 }
   0x3   :  { %12 = vsyncpa [#allocation4 + $0x1], 0  ;;  %s754_s9 = smov 0   ;;  %s756_s10 = smov 0  }
   0x4   :  { %s758_s11 = smov 0   ;;  %s760_s12 = smov 0  }
   0x5 LB: > { %s775_s13 = sadd.s32 4294967295, %s731_s12   ;;  %s535_s14 = sadd.s32 4294967294, %s731_s12   ;;  %s731_s12 = sphi %s760_s12, %s1179_s12   ;;  %s727_s11 = sphi %s758_s11, %s1178_s11   ;;  %s723_s10 = sphi %s756_s10, %s1177_s10   ;;  %s719_s9 = sphi %s754_s9, %s1176_s9  }
   0x6   : > { %s779_s15 = sadd.s32 1, %s731_s12   ;;  %s25_s16 = sadd.s32 1, %s727_s11 }
   0x7   : > { %s22_s17 = ssub.s32 %s731_s12, %s779_s15  ;;  %p32_p0 = scmp.ne.s32.totalorder %s727_s11, %s723_s10 }
   0x8   : > { %p23_p1 = scmp.eq.s32.totalorder %s22_s17, 0  ;;  %p33_p2 = scmp.eq.s32.totalorder %s731_s12, 0 }
   0x9   : > { %p38_p3 = scmp.ne.s32.totalorder %s723_s10, %s719_s9  ;;  %p39_p4 = scmp.eq.s32.totalorder %s775_s13, 0 }
   0xa   : > { %s791_s18 = scalar_select %p23_p1, %s727_s11, %s25_s16  }
   0xb   : > { %p793_p5 = por %p33_p2, %p32_p0  ;;  %p797_p6 = por %p39_p4, %p38_p3 }
   0xc   : > { %p83_p7 = scmp.eq.s32.totalorder %s775_s13, 3  ;;  %p89_p8 = scmp.eq.s32.totalorder %s535_s14, 3 }
   0xd   : > { %p565_p9 = scmp.lt.s32.totalorder %s731_s12, 4  ;;  %s112_s23 = sand.u32 1, %s727_s11  }
   0xe   : > { %p803_p10 = por %p83_p7, %p32_p0  ;;  %p807_p11 = por %p89_p8, %p38_p3 }
   0xf   : > { %s551_s24 = sshll.u32 %s731_s12, 11  ;;  %s538_s25 = sshll.u32 %s112_s23, 7 }
  0x10   : > { %s1171_s21 = scalar_select %p803_p10, 1, 0 }
  0x11   : > { %s1172_s22 = scalar_select %p807_p11, 1, 0 }
  0x12   : > { %s816_s28 = scalar_lea.hbm %s1165_s0, %s551_s24  ;;  %s116_s29 = scalar_lea.vmem [#allocation2], %s538_s25 }
  0x13   : > { %s123_s30 = sshll.u32 %s116_s29, 4  ;;  %p820_p12 = pnand %p565_p9, %p793_p5  ;;  %s824_s30 = int_to_ptr.vmem [resolvable:$true] %s123_s30 }
  0x14   : > { %s826_s4 = scalar_lea.sflag [#allocation3], %s112_s23  ;;  %s635_s5 = scalar_lea.hbm %s816_s28, 2048 }
  0x15   : > { %p636_p13 = scmp.ne.s32.totalorder %s816_s28, %s635_s5  ;;  %p637_p0 = pneg %p820_p12 }
  0x16   : > { %s640_s8 = scalar_lea.hbm %s1165_s0, 8192  ;;  %p641_p3 = scmp.lt.u32.totalorder %s816_s28, %s1165_s0 }
  0x17   : > { %p638_p1 = pnand %p637_p0, %p636_p13  ;;  %p642_p4 = scmp.lt.u32.totalorder %s640_s8, %s635_s5 }
  0x18   : > { %p644_p7 = scmp.lt.u32.totalorder %s635_s5, %s816_s28 }
  0x19   : > { %p639_p2 = pneg %p638_p1  ;;  %p643_p5 = por %p642_p4, %p641_p3 }
  0x1b   : > { %p645_p8 = por %p644_p7, %p643_p5 }
  0x1d   : > { %p646_p9 = pnand %p645_p8, %p639_p2 }
  0x1f   : > { %649 = shalt.err (!%p646_p9)
}
  0x20   : > { %s650_s17 = scalar_lea.vmem %s824_s30, 2048  ;;  %s733_s19 = smov [#allocation2]  }
  0x21   : > { %p651_p13 = scmp.ne.s32.totalorder %s824_s30, %s650_s17  ;;  %s655_s23 = sshll.u32 %s733_s19, 4  ;;  %s656_s23 = int_to_ptr.vmem [resolvable:$false] %s655_s23 }
  0x22   : > { %s657_s24 = scalar_lea.vmem %s656_s23, 4096  ;;  %p658_p10 = scmp.lt.s32.totalorder %s824_s30, %s656_s23 }
  0x23   : > { %p653_p1 = pnand %p651_p13, %p637_p0  ;;  %p659_p3 = scmp.lt.s32.totalorder %s657_s24, %s650_s17 }
  0x25   : > { %p654_p11 = pneg %p653_p1  ;;  %p660_p4 = por %p659_p3, %p658_p10 }
  0x27   : > { %p661_p5 = pnand %p660_p4, %p654_p11 }
  0x29   : > { %664 = shalt.err (!%p661_p5)
}
  0x2a   : > { %s734_s25 = smov 128   ;;  %s735_s26 = smov 8  }
  0x2b   : > { %560 = dma.hbm_to_vmem [thread:$0]  (!%p820_p12), %s816_s28, 2048, %s824_s30, %s826_s4, %s734_s25, %s734_s25, %s735_s26  }
  0x2c   : > { %p541_p0 = scmp.ge.s32.totalorder %s731_s12, 1  ;;  %p131_p2 = scmp.lt.s32.totalorder %s731_s12, 5 }
  0x2e   : > { %p132_p7 = pnand %p541_p0, %p131_p2 }
  0x2f   : > { %s857_s27 = sand.u32 (!%p132_p7), 1, %s723_s10  }
  0x30   : > { %135 = sbr.rel (%p132_p7) target bundleno = 417 (0x1a1), region = 28  ;;  %s542_s29 = sshll.u32 (!%p132_p7), %s857_s27, 7 }
  0x31   : > { %s138_s5 = scalar_lea.sflag (!%p132_p7), [#allocation3], %s857_s27  ;;  %s863_s6 = scalar_lea.vmem (!%p132_p7), [#allocation2], %s542_s29 }
  0x37   : > { %710 = dma.done.wait (%p797_p6), %s138_s5, 2048  }
  0x38   : > { %712 = vsyncadd (%p797_p6), %s138_s5, 4294965248  ;;  %vm180_vm0 = vcmask 261120   ;;  %v164_v0 = vld [vmem:[%s863_s6] sm:$0xff]  ;;  %v166_v1 = vld [vmem:[%s863_s6 + $0x10] sm:$0xff]  ;;  %s1038_s4 = scalar_lea.vmem [#allocation5], %s542_s29  ;;  %s552_s7 = sshll.u32 %s775_s13, 11 }
  0x39   : > { %v165_v2 = vld [vmem:[%s863_s6 + $0x8] sm:$0xff]  ;;  %v181_v3 = vsel %vm180_vm0, %v164_v0, 0.0  ;;  %v187_v4 = vsel %vm180_vm0, %v166_v1, 0.0  ;;  %v167_v5 = vld [vmem:[%s863_s6 + $0x18] sm:$0xff]  ;;  %v168_v8 = vld [vmem:[%s863_s6 + $0x20] sm:$0xff]  ;;  %s462_s8 = sshll.u32 %s1038_s4, 4  ;;  %s1117_s17 = scalar_lea.hbm %s1167_s2, %s552_s7  ;;  %s1119_s8 = int_to_ptr.vmem [resolvable:$true] %s462_s8 }
  0x3a   : > { %182 = vadd.xlane.f32.xlu0 %v181_v3  ;;  %188 = vadd.xlane.f32.xlu1 %v187_v4  ;;  %v184_v6 = vsel %vm180_vm0, %v165_v2, 0.0  ;;  %v190_v7 = vsel %vm180_vm0, %v167_v5, 0.0  ;;  %v169_v9 = vld [vmem:[%s863_s6 + $0x28] sm:$0xff]  ;;  %v193_v10 = vsel %vm180_vm0, %v168_v8, 0.0  ;;  %v882_v12 = vld [vmem:[%s863_s6 + $0x30] sm:$0xff]  ;;  %v885_v13 = vld [vmem:[%s863_s6 + $0x38] sm:$0xff] }
  0x3b   : > { %v196_v11 = vsel %vm180_vm0, %v169_v9, 0.0  ;;  %v199_v14 = vsel %vm180_vm0, %v882_v12, 0.0  ;;  %v202_v15 = vsel %vm180_vm0, %v885_v13, 0.0  ;;  %v892_v16 = vld [vmem:[%s863_s6 + $0x40] sm:$0xff]  ;;  %v895_v17 = vld [vmem:[%s863_s6 + $0x48] sm:$0xff]  ;;  %v902_v20 = vld [vmem:[%s863_s6 + $0x50] sm:$0xff] }
  0x3c   : > { %v205_v18 = vsel %vm180_vm0, %v892_v16, 0.0  ;;  %v208_v19 = vsel %vm180_vm0, %v895_v17, 0.0  ;;  %v905_v21 = vld [vmem:[%s863_s6 + $0x58] sm:$0xff]  ;;  %v211_v22 = vsel %vm180_vm0, %v902_v20, 0.0  ;;  %v912_v24 = vld [vmem:[%s863_s6 + $0x60] sm:$0xff]  ;;  %v915_v25 = vld [vmem:[%s863_s6 + $0x68] sm:$0xff] }
  0x3d   : > { %v214_v23 = vsel %vm180_vm0, %v905_v21, 0.0  ;;  %v217_v26 = vsel %vm180_vm0, %v912_v24, 0.0  ;;  %v220_v27 = vsel %vm180_vm0, %v915_v25, 0.0  ;;  %v922_v28 = vld [vmem:[%s863_s6 + $0x70] sm:$0xff]  ;;  %v925_v29 = vld [vmem:[%s863_s6 + $0x78] sm:$0xff]  ;;  %s449_s13 = scalar_lea.sflag [#allocation4], %s857_s27 }
  0x3e   : > { %185 = vadd.xlane.f32.xlu0 %v184_v6  ;;  %191 = vadd.xlane.f32.xlu1 %v190_v7  ;;  %v223_v30 = vsel %vm180_vm0, %v922_v28, 0.0  ;;  %v226_v31 = vsel %vm180_vm0, %v925_v29, 0.0  ;;  %s665_s19 = scalar_lea.vmem %s1119_s8, 2048  ;;  %p1174_p10 = scmp.ne.s32.totalorder %s1171_s21, 0 }
  0x3f   : > { %p666_p6 = scmp.ne.s32.totalorder %s1119_s8, %s665_s19  ;;  %s736_s23 = smov [#allocation5]  }
  0x40   : > { %s669_s24 = sshll.u32 %s736_s23, 4  ;;  %s670_s24 = int_to_ptr.vmem [resolvable:$false] %s669_s24 }
  0x41   : > { %p667_p11 = pnand %p666_p6, %p1174_p10  ;;  %s671_s25 = scalar_lea.vmem %s670_s24, 4096 }
  0x42   : > { %194 = vadd.xlane.f32.xlu0 %v193_v10  ;;  %197 = vadd.xlane.f32.xlu1 %v196_v11  ;;  %p672_p8 = scmp.lt.s32.totalorder %s1119_s8, %s670_s24  ;;  %p673_p9 = scmp.lt.s32.totalorder %s671_s25, %s665_s19 }
  0x43   : > { %p668_p12 = pneg %p667_p11 }
  0x44   : > { %p674_p13 = por %p673_p9, %p672_p8 }
  0x46   : > { %200 = vadd.xlane.f32.xlu0 %v199_v14  ;;  %203 = vadd.xlane.f32.xlu1 %v202_v15  ;;  %p675_p1 = pnand %p674_p13, %p668_p12 }
  0x4a   : > { %206 = vadd.xlane.f32.xlu0 %v205_v18  ;;  %209 = vadd.xlane.f32.xlu1 %v208_v19 }
  0x4e   : > { %212 = vadd.xlane.f32.xlu0 %v211_v22  ;;  %215 = vadd.xlane.f32.xlu1 %v214_v23 }
  0x52   : > { %218 = vadd.xlane.f32.xlu0 %v217_v26  ;;  %221 = vadd.xlane.f32.xlu1 %v220_v27 }
  0x56   : > { %224 = vadd.xlane.f32.xlu0 %v223_v30  ;;  %227 = vadd.xlane.f32.xlu1 %v226_v31 }
  0xc7   : > { %v183_v32 = vpop.xlane.xlu0 %182  ;;  %v189_v33 = vpop.xlane.xlu1 %188 }
  0xc8   : > { %v230_v34 = vmul.f32 0.03125, %v183_v32  ;;  %v232_v35 = vmul.f32 0.03125, %v189_v33 }
  0xca   : > { %v931_v36 = vsub.f32 %v164_v0, %v230_v34  ;;  %v933_v37 = vsub.f32 %v166_v1, %v232_v35 }
  0xcb   : > { %v186_v38 = vpop.xlane.xlu0 %185  ;;  %v192_v39 = vpop.xlane.xlu1 %191 }
  0xcc   : > { %v231_v40 = vmul.f32 0.03125, %v186_v38  ;;  %v233_v41 = vmul.f32 0.03125, %v192_v39  ;;  %v262_v42 = vmul.f32 %v931_v36, %v931_v36  ;;  %v264_v43 = vmul.f32 %v933_v37, %v933_v37 }
  0xce   : > { %v939_v44 = vsub.f32 %v165_v2, %v231_v40  ;;  %v941_v45 = vsub.f32 %v167_v5, %v233_v41  ;;  %v278_v46 = vsel %vm180_vm0, %v262_v42, 0.0  ;;  %v284_v49 = vsel %vm180_vm0, %v264_v43, 0.0 }
  0xcf   : > { %279 = vadd.xlane.f32.xlu0 %v278_v46  ;;  %v195_v47 = vpop.xlane.xlu0 %194  ;;  %v198_v48 = vpop.xlane.xlu1 %197 }
  0xd0   : > { %v234_v50 = vmul.f32 0.03125, %v195_v47  ;;  %v235_v51 = vmul.f32 0.03125, %v198_v48  ;;  %v263_v52 = vmul.f32 %v939_v44, %v939_v44  ;;  %v265_v53 = vmul.f32 %v941_v45, %v941_v45 }
  0xd2   : > { %v949_v54 = vsub.f32 %v168_v8, %v234_v50  ;;  %v951_v55 = vsub.f32 %v169_v9, %v235_v51  ;;  %v281_v56 = vsel %vm180_vm0, %v263_v52, 0.0  ;;  %v287_v59 = vsel %vm180_vm0, %v265_v53, 0.0 }
  0xd3   : > { %285 = vadd.xlane.f32.xlu0 %v284_v49  ;;  %282 = vadd.xlane.f32.xlu1 %v281_v56  ;;  %v201_v57 = vpop.xlane.xlu0 %200  ;;  %v204_v58 = vpop.xlane.xlu1 %203 }
  0xd4   : > { %v236_v60 = vmul.f32 0.03125, %v201_v57  ;;  %v237_v61 = vmul.f32 0.03125, %v204_v58  ;;  %v266_v62 = vmul.f32 %v949_v54, %v949_v54  ;;  %v267_v63 = vmul.f32 %v951_v55, %v951_v55 }
  0xd6   : > { %v960_v0 = vsub.f32 %v882_v12, %v236_v60  ;;  %v963_v1 = vsub.f32 %v885_v13, %v237_v61  ;;  %v290_v2 = vsel %vm180_vm0, %v266_v62, 0.0  ;;  %v293_v5 = vsel %vm180_vm0, %v267_v63, 0.0 }
  0xd7   : > { %288 = vadd.xlane.f32.xlu1 %v287_v59  ;;  %291 = vadd.xlane.f32.xlu0 %v290_v2  ;;  %v207_v3 = vpop.xlane.xlu0 %206  ;;  %v210_v4 = vpop.xlane.xlu1 %209 }
  0xd8   : > { %v238_v6 = vmul.f32 0.03125, %v207_v3  ;;  %v239_v7 = vmul.f32 0.03125, %v210_v4  ;;  %v268_v8 = vmul.f32 %v960_v0, %v960_v0  ;;  %v269_v9 = vmul.f32 %v963_v1, %v963_v1 }
  0xda   : > { %v972_v10 = vsub.f32 %v892_v16, %v238_v6  ;;  %v975_v11 = vsub.f32 %v895_v17, %v239_v7  ;;  %v296_v12 = vsel %vm180_vm0, %v268_v8, 0.0  ;;  %v299_v15 = vsel %vm180_vm0, %v269_v9, 0.0 }
  0xdb   : > { %294 = vadd.xlane.f32.xlu1 %v293_v5  ;;  %297 = vadd.xlane.f32.xlu0 %v296_v12  ;;  %v213_v13 = vpop.xlane.xlu0 %212  ;;  %v216_v14 = vpop.xlane.xlu1 %215 }
  0xdc   : > { %v240_v18 = vmul.f32 0.03125, %v213_v13  ;;  %v241_v19 = vmul.f32 0.03125, %v216_v14  ;;  %v270_v22 = vmul.f32 %v972_v10, %v972_v10  ;;  %v271_v16 = vmul.f32 %v975_v11, %v975_v11  ;;  %v1024_v14 = vld [vmem:[%s1166_s1] ss:$0 sm:$0xff] }
  0xde   : > { %v984_v23 = vsub.f32 %v902_v20, %v240_v18  ;;  %v987_v17 = vsub.f32 %v905_v21, %v241_v19  ;;  %v302_v26 = vsel %vm180_vm0, %v270_v22, 0.0  ;;  %v305_v31 = vsel %vm180_vm0, %v271_v16, 0.0 }
  0xdf   : > { %300 = vadd.xlane.f32.xlu1 %v299_v15  ;;  %303 = vadd.xlane.f32.xlu0 %v302_v26  ;;  %v219_v27 = vpop.xlane.xlu0 %218  ;;  %v222_v30 = vpop.xlane.xlu1 %221  ;;  %v1030_v26 = vld [vmem:[%s1166_s1 + $0x1] ss:$0 sm:$0xff] }
  0xe0   : > { %v242_v32 = vmul.f32 0.03125, %v219_v27  ;;  %v243_v33 = vmul.f32 0.03125, %v222_v30  ;;  %v272_v34 = vmul.f32 %v984_v23, %v984_v23  ;;  %v273_v20 = vmul.f32 %v987_v17, %v987_v17 }
  0xe2   : > { %v996_v35 = vsub.f32 %v912_v24, %v242_v32  ;;  %v999_v21 = vsub.f32 %v915_v25, %v243_v33  ;;  %v308_v38 = vsel %vm180_vm0, %v272_v34, 0.0  ;;  %v311_v41 = vsel %vm180_vm0, %v273_v20, 0.0 }
  0xe3   : > { %306 = vadd.xlane.f32.xlu1 %v305_v31  ;;  %309 = vadd.xlane.f32.xlu0 %v308_v38  ;;  %v225_v39 = vpop.xlane.xlu0 %224  ;;  %v228_v40 = vpop.xlane.xlu1 %227 }
  0xe4   : > { %v244_v42 = vmul.f32 0.03125, %v225_v39  ;;  %v245_v43 = vmul.f32 0.03125, %v228_v40  ;;  %v274_v46 = vmul.f32 %v996_v35, %v996_v35  ;;  %v275_v24 = vmul.f32 %v999_v21, %v999_v21 }
  0xe6   : > { %v1008_v47 = vsub.f32 %v922_v28, %v244_v42  ;;  %v1011_v25 = vsub.f32 %v925_v29, %v245_v43  ;;  %v314_v48 = vsel %vm180_vm0, %v274_v46, 0.0  ;;  %v317_v49 = vsel %vm180_vm0, %v275_v24, 0.0 }
  0xe7   : > { %312 = vadd.xlane.f32.xlu1 %v311_v41  ;;  %315 = vadd.xlane.f32.xlu0 %v314_v48 }
  0xe8   : > { %v276_v50 = vmul.f32 %v1008_v47, %v1008_v47  ;;  %v277_v51 = vmul.f32 %v1011_v25, %v1011_v25 }
  0xea   : > { %v320_v52 = vsel %vm180_vm0, %v276_v50, 0.0  ;;  %v323_v28 = vsel %vm180_vm0, %v277_v51, 0.0 }
  0xeb   : > { %318 = vadd.xlane.f32.xlu1 %v317_v49  ;;  %321 = vadd.xlane.f32.xlu0 %v320_v52 }
  0xef   : > { %324 = vadd.xlane.f32.xlu1 %v323_v28 }
 0x15c   : > { %v280_v29 = vpop.xlane.xlu0 %279 }
 0x15d   : > { %v326_v53 = vmul.f32 0.03125, %v280_v29 }
 0x15f   : > { %v342_v56 = vadd.f32 1e-06, %v326_v53 }
 0x160   : > { %v283_v57 = vpop.xlane.xlu1 %282  ;;  %v286_v58 = vpop.xlane.xlu0 %285 }
 0x161   : > { %603 = vrsqrt.f32 %v342_v56  ;;  %v327_v59 = vmul.f32 0.03125, %v283_v57  ;;  %v328_v60 = vmul.f32 0.03125, %v286_v58 }
 0x163   : > { %v343_v61 = vadd.f32 1e-06, %v327_v59  ;;  %v344_v62 = vadd.f32 1e-06, %v328_v60 }
 0x164   : > { %v289_v63 = vpop.xlane.xlu1 %288  ;;  %v292_v2 = vpop.xlane.xlu0 %291 }
 0x165   : > { %605 = vrsqrt.f32 %v343_v61  ;;  %v329_v3 = vmul.f32 0.03125, %v289_v63  ;;  %v330_v4 = vmul.f32 0.03125, %v292_v2 }
 0x166   : > { %607 = vrsqrt.f32 %v344_v62 }
 0x167   : > { %v345_v5 = vadd.f32 1e-06, %v329_v3  ;;  %v346_v6 = vadd.f32 1e-06, %v330_v4 }
 0x168   : > { %v295_v7 = vpop.xlane.xlu1 %294  ;;  %v298_v8 = vpop.xlane.xlu0 %297 }
 0x169   : > { %609 = vrsqrt.f32 %v345_v5  ;;  %v331_v9 = vmul.f32 0.03125, %v295_v7  ;;  %v332_v12 = vmul.f32 0.03125, %v298_v8 }
 0x16a   : > { %611 = vrsqrt.f32 %v346_v6 }
 0x16b   : > { %v604_v13 = vpop.eup %603  ;;  %v347_v15 = vadd.f32 1e-06, %v331_v9  ;;  %v348_v18 = vadd.f32 1e-06, %v332_v12 }
 0x16c   : > { %v374_v19 = vmul.f32 %v604_v13, %v931_v36  ;;  %v301_v22 = vpop.xlane.xlu1 %300  ;;  %v304_v16 = vpop.xlane.xlu0 %303 }
 0x16d   : > { %613 = vrsqrt.f32 %v347_v15  ;;  %v333_v27 = vmul.f32 0.03125, %v301_v22  ;;  %v334_v30 = vmul.f32 0.03125, %v304_v16 }
 0x16e   : > { %v395_v31 = vmul.f32 %v1024_v14, %v374_v19  ;;  %615 = vrsqrt.f32 %v348_v18 }
 0x16f   : > { %v606_v32 = vpop.eup %605  ;;  %v349_v33 = vadd.f32 1e-06, %v333_v27  ;;  %v350_v34 = vadd.f32 1e-06, %v334_v30 }
 0x170   : > { %v608_v20 = vpop.eup %607  ;;  %v416_v36 = vadd.f32 %v1030_v26, %v395_v31  ;;  %v375_v38 = vmul.f32 %v606_v32, %v939_v44  ;;  %v307_v39 = vpop.xlane.xlu1 %306 }
 0x171   : > { %v310_v40 = vpop.xlane.xlu0 %309  ;;  %v376_v41 = vmul.f32 %v608_v20, %v933_v37  ;;  %617 = vrsqrt.f32 %v349_v33  ;;  %v335_v42 = vmul.f32 0.03125, %v307_v39 }
 0x172   : > { %v336_v43 = vmul.f32 0.03125, %v310_v40  ;;  %432 = vst.msk [vmem:[%s1038_s4] sm:$0xff] %vm180_vm0, %v416_v36  ;;  %v396_v46 = vmul.f32 %v1024_v14, %v375_v38  ;;  %619 = vrsqrt.f32 %v350_v34 }
 0x173   : > { %v610_v24 = vpop.eup %609  ;;  %v397_v44 = vmul.f32 %v1024_v14, %v376_v41  ;;  %v351_v48 = vadd.f32 1e-06, %v335_v42 }
 0x174   : > { %v352_v49 = vadd.f32 1e-06, %v336_v43  ;;  %v612_v37 = vpop.eup %611  ;;  %v417_v50 = vadd.f32 %v1030_v26, %v396_v46  ;;  %v377_v51 = vmul.f32 %v610_v24, %v941_v45  ;;  %v313_v52 = vpop.xlane.xlu1 %312 }
 0x175   : > { %v316_v28 = vpop.xlane.xlu0 %315  ;;  %v418_v29 = vadd.f32 %v1030_v26, %v397_v44  ;;  %v378_v53 = vmul.f32 %v612_v37, %v949_v54  ;;  %621 = vrsqrt.f32 %v351_v48  ;;  %v337_v56 = vmul.f32 0.03125, %v313_v52 }
 0x176   : > { %433 = vst.msk [vmem:[%s1038_s4 + $0x8] sm:$0xff] %vm180_vm0, %v417_v50  ;;  %v398_v57 = vmul.f32 %v1024_v14, %v377_v51  ;;  %623 = vrsqrt.f32 %v352_v49  ;;  %v338_v58 = vmul.f32 0.03125, %v316_v28 }
 0x177   : > { %v614_v59 = vpop.eup %613  ;;  %434 = vst.msk [vmem:[%s1038_s4 + $0x10] sm:$0xff] %vm180_vm0, %v418_v29  ;;  %v399_v45 = vmul.f32 %v1024_v14, %v378_v53  ;;  %v353_v60 = vadd.f32 1e-06, %v337_v56 }
 0x178   : > { %v616_v61 = vpop.eup %615  ;;  %v419_v62 = vadd.f32 %v1030_v26, %v398_v57  ;;  %v379_v54 = vmul.f32 %v614_v59, %v951_v55  ;;  %v354_v63 = vadd.f32 1e-06, %v338_v58  ;;  %v319_v2 = vpop.xlane.xlu1 %318 }
 0x179   : > { %v322_v3 = vpop.xlane.xlu0 %321  ;;  %v420_v4 = vadd.f32 %v1030_v26, %v399_v45  ;;  %v380_v5 = vmul.f32 %v616_v61, %v960_v0  ;;  %625 = vrsqrt.f32 %v353_v60  ;;  %v339_v6 = vmul.f32 0.03125, %v319_v2 }
 0x17a   : > { %435 = vst.msk [vmem:[%s1038_s4 + $0x18] sm:$0xff] %vm180_vm0, %v419_v62  ;;  %v400_v7 = vmul.f32 %v1024_v14, %v379_v54  ;;  %627 = vrsqrt.f32 %v354_v63  ;;  %v340_v8 = vmul.f32 0.03125, %v322_v3 }
 0x17b   : > { %v618_v9 = vpop.eup %617  ;;  %436 = vst.msk [vmem:[%s1038_s4 + $0x20] sm:$0xff] %vm180_vm0, %v420_v4  ;;  %v401_v55 = vmul.f32 %v1024_v14, %v380_v5  ;;  %v355_v12 = vadd.f32 1e-06, %v339_v6 }
 0x17c   : > { %v620_v13 = vpop.eup %619  ;;  %v421_v15 = vadd.f32 %v1030_v26, %v400_v7  ;;  %v381_v0 = vmul.f32 %v618_v9, %v963_v1  ;;  %v356_v18 = vadd.f32 1e-06, %v340_v8  ;;  %v325_v19 = vpop.xlane.xlu1 %324 }
 0x17d   : > { %v422_v22 = vadd.f32 %v1030_v26, %v401_v55  ;;  %v382_v16 = vmul.f32 %v620_v13, %v972_v10  ;;  %629 = vrsqrt.f32 %v355_v12  ;;  %v341_v27 = vmul.f32 0.03125, %v325_v19 }
 0x17e   : > { %437 = vst.msk [vmem:[%s1038_s4 + $0x28] sm:$0xff] %vm180_vm0, %v421_v15  ;;  %v402_v30 = vmul.f32 %v1024_v14, %v381_v0  ;;  %631 = vrsqrt.f32 %v356_v18 }
 0x17f   : > { %v622_v31 = vpop.eup %621  ;;  %438 = vst.msk [vmem:[%s1038_s4 + $0x30] sm:$0xff] %vm180_vm0, %v422_v22  ;;  %v403_v1 = vmul.f32 %v1024_v14, %v382_v16  ;;  %v357_v32 = vadd.f32 1e-06, %v341_v27 }
 0x180   : > { %v624_v33 = vpop.eup %623  ;;  %v423_v34 = vadd.f32 %v1030_v26, %v402_v30  ;;  %v383_v10 = vmul.f32 %v622_v31, %v975_v11 }
 0x181   : > { %v424_v20 = vadd.f32 %v1030_v26, %v403_v1  ;;  %v384_v36 = vmul.f32 %v624_v33, %v984_v23  ;;  %633 = vrsqrt.f32 %v357_v32 }
 0x182   : > { %439 = vst.msk [vmem:[%s1038_s4 + $0x38] sm:$0xff] %vm180_vm0, %v423_v34  ;;  %v404_v38 = vmul.f32 %v1024_v14, %v383_v10 }
 0x183   : > { %v626_v39 = vpop.eup %625  ;;  %440 = vst.msk [vmem:[%s1038_s4 + $0x40] sm:$0xff] %vm180_vm0, %v424_v20  ;;  %v405_v40 = vmul.f32 %v1024_v14, %v384_v36 }
 0x184   : > { %v628_v41 = vpop.eup %627  ;;  %v425_v42 = vadd.f32 %v1030_v26, %v404_v38  ;;  %v385_v11 = vmul.f32 %v626_v39, %v987_v17 }
 0x185   : > { %v426_v43 = vadd.f32 %v1030_v26, %v405_v40  ;;  %v386_v23 = vmul.f32 %v628_v41, %v996_v35 }
 0x186   : > { %441 = vst.msk [vmem:[%s1038_s4 + $0x48] sm:$0xff] %vm180_vm0, %v425_v42  ;;  %v406_v46 = vmul.f32 %v1024_v14, %v385_v11 }
 0x187   : > { %v630_v24 = vpop.eup %629  ;;  %442 = vst.msk [vmem:[%s1038_s4 + $0x50] sm:$0xff] %vm180_vm0, %v426_v43  ;;  %v407_v44 = vmul.f32 %v1024_v14, %v386_v23 }
 0x188   : > { %v632_v48 = vpop.eup %631  ;;  %v427_v17 = vadd.f32 %v1030_v26, %v406_v46  ;;  %v387_v49 = vmul.f32 %v630_v24, %v999_v21 }
 0x189   : > { %v428_v35 = vadd.f32 %v1030_v26, %v407_v44  ;;  %v388_v37 = vmul.f32 %v632_v48, %v1008_v47 }
 0x18a   : > { %443 = vst.msk [vmem:[%s1038_s4 + $0x58] sm:$0xff] %vm180_vm0, %v427_v17  ;;  %v408_v50 = vmul.f32 %v1024_v14, %v387_v49 }
 0x18b   : > { %v634_v51 = vpop.eup %633  ;;  %444 = vst.msk [vmem:[%s1038_s4 + $0x60] sm:$0xff] %vm180_vm0, %v428_v35  ;;  %v409_v52 = vmul.f32 %v1024_v14, %v388_v37 }
 0x18c   : > { %v429_v28 = vadd.f32 %v1030_v26, %v408_v50  ;;  %v389_v21 = vmul.f32 %v634_v51, %v1011_v25 }
 0x18d   : > { %v430_v47 = vadd.f32 %v1030_v26, %v409_v52 }
 0x18e   : > { %445 = vst.msk [vmem:[%s1038_s4 + $0x68] sm:$0xff] %vm180_vm0, %v429_v28  ;;  %v410_v29 = vmul.f32 %v1024_v14, %v389_v21 }
 0x18f   : > { %446 = vst.msk [vmem:[%s1038_s4 + $0x70] sm:$0xff] %vm180_vm0, %v430_v47 }
 0x190   : > { %v431_v25 = vadd.f32 %v1030_v26, %v410_v29 }
 0x192   : > { %447 = vst.msk [vmem:[%s1038_s4 + $0x78] sm:$0xff] %vm180_vm0, %v431_v25 }
 0x193   : > { %678 = shalt.err (!%p675_p1)
}
 0x194   : > { %s679_s26 = scalar_lea.hbm %s1117_s17, 2048  ;;  %s683_s6 = scalar_lea.hbm %s1167_s2, 8192 }
 0x195   : > { %p680_p3 = scmp.ne.s32.totalorder %s1117_s17, %s679_s26  ;;  %p684_p0 = scmp.lt.u32.totalorder %s1117_s17, %s1167_s2 }
 0x196   : > { %p685_p2 = scmp.lt.u32.totalorder %s683_s6, %s679_s26  ;;  %p687_p6 = scmp.lt.u32.totalorder %s679_s26, %s1117_s17 }
 0x197   : > { %p681_p4 = pnand %p680_p3, %p1174_p10 }
 0x198   : > { %p686_p7 = por %p685_p2, %p684_p0 }
 0x199   : > { %p682_p5 = pneg %p681_p4 }
 0x19a   : > { %p688_p11 = por %p687_p6, %p686_p7 }
 0x19c   : > { %p689_p12 = pnand %p688_p11, %p682_p5 }
 0x19e   : > { %692 = shalt.err (!%p689_p12)
}
 0x19f   : > { %s737_s30 = smov 128   ;;  %s738_s3 = smov 8  }
 0x1a0   : > { %555 = dma.vmem_to_hbm [thread:$0]  (%p1174_p10), %s1119_s8, 2048, %s1117_s17, %s449_s13, %s737_s30, %s737_s30, %s738_s3  }
 0x1a1 PF: > { %p566_p8 = scmp.ge.s32.totalorder %s731_s12, 2  ;;  %s477_s4 = sand.u32 1, %s719_s9  }
 0x1a2   : > { %p1175_p9 = scmp.ne.s32.totalorder %s1172_s22, 0  ;;  %s478_s7 = scalar_lea.sflag [#allocation4], %s477_s4 }
 0x1a4   : > { %p562_p13 = pnand %p566_p8, %p1175_p9 }
 0x1a6   : > { %714 = dma.done.wait (!%p562_p13), %s478_s7, 2048  }
 0x1a7   : > { %716 = vsyncadd (!%p562_p13), %s478_s7, 4294965248  ;;  %p15_p1 = scmp.ge.s32.totalorder %s779_s15, 6   ;;  %s1176_s9 = smov %s723_s10 }
 0x1a8   : > { %s1177_s10 = smov %s727_s11  ;;  %s1178_s11 = smov %s791_s18 }
 0x1a9   : > { %s1179_s12 = smov %s779_s15  ;;  %17 = sbr.rel (!%p15_p1) target bundleno = 5 (0x5), region = 73 }
 0x1b0   :  { %483 = vsyncpa [#allocation3], 1 }
 0x1b1   :  { %485 = vsyncpa [#allocation3 + $0x1], 1 }
 0x1b2   :  { %486 = vsyncpa [#allocation4], 1 }
 0x1b3   :  { %488 = vsyncpa [#allocation4 + $0x1], 1 }

</bundles_post_ra>
